<compile_context>
chip_gen: v5e
topology: v5e:2x2
jax: 0.10.0
libtpu: 0.0.40
codegen_flags: <defaults>
</compile_context>

<pallas_src>
import jax
import jax.numpy as jnp
from jax.experimental import pallas as pl
from jax.experimental.pallas import tpu as pltpu


_LANE = 128
_MAX_BLOCK_COLS = 2048                 # lane-dense but bounded block width
_TILE_BYTE_BUDGET = 4 * 1024 * 1024    # ~4 MiB/tile; x2 operands x2 buffers
                                       # => ~16 MiB, safe on v7x (64 MiB VMEM)
_VMEM_LIMIT_BYTES = 32 * 1024 * 1024   # explicit scoped-VMEM limit (v5e default
                                       # is only 16 MiB; v6e/v7x default 32 MiB)


def _copy_kernel(x_ref, o_ref):
    # TODO(synk): concrete subclasses replace this body with their real compute
    # (matmul / conv / reduction).  Skeleton hot path = straight VMEM copy.
    o_ref[...] = x_ref[...]


def _sublane_align(dtype) -> int:
    """Dtype-aware sublane multiple: f32/i32 -> 8, bf16/f16 -> 16, int8 -> 32."""
    return max(8, 32 // jnp.dtype(dtype).itemsize)


def _pick_cols(n: int, orig_shape, ndim: int) -> int:
    """Choose the lane (last) dim of the 2-D slab view of the flat tensor."""
    if n % _LANE == 0:
        # Lane-dense slab: last dim a large multiple of 128 that divides n.
        cols = min(n, _MAX_BLOCK_COLS)
        cols -= cols % _LANE
        while cols > _LANE and n % cols != 0:
            cols -= _LANE
        return max(cols, _LANE)
    if ndim >= 2:
        # Collapse leading dims; last dim stays as the (full-extent) lane dim.
        return orig_shape[-1]
    return n


def _pick_block_cols(cols: int) -> int:
    """Largest multiple of 128 dividing `cols` (capped), else full extent."""
    if cols % _LANE != 0:
        return cols  # full-extent lane dim (allowed by the (8,128) rule)
    bc = min(cols, _MAX_BLOCK_COLS)
    while bc > _LANE and cols % bc != 0:
        bc -= _LANE
    return max(bc, _LANE)


def _pick_block_rows(rows: int, align: int, block_cols: int, itemsize: int,
                     n_col_blocks: int) -> int:
    """Sublane-aligned row-block size under the per-tile VMEM budget."""
    target = _TILE_BYTE_BUDGET // max(1, block_cols * itemsize)
    target = max(align, (target // align) * align)
    if rows <= target:
        # Whole row extent fits in one tile.  If the grid would otherwise be a
        # single step over a non-trivial amount of data, split the rows into
        # two aligned blocks so a "parallel" grid lets v7x's 2 TensorCores
        # share the stream; otherwise keep the full extent (lowest overhead).
        total_bytes = rows * block_cols * n_col_blocks * itemsize
        if n_col_blocks == 1 and rows >= 2 * align and total_bytes >= (1 << 20):
            return align * pl.cdiv(rows, 2 * align)
        return rows
    # rows > target: prefer an aligned divisor of rows (fully divisible grid,
    # no partial blocks at all).
    c = target
    while c >= align:
        if rows % c == 0:
            return c
        c -= align
    # No aligned divisor <= target: use the aligned target; the last (partial)
    # row block is masked by the pipeline (no whole-tensor padding / no extra
    # HBM traffic).
    return target


def base_forward(x: jax.Array) -> jax.Array:
    """Pass-through 'forward' for the abstract Base_ module (Pallas skeleton).

    Any-rank input is viewed (free contiguous reshape, no HBM copy) as a
    lane-dense 2-D slab, streamed through a tiled Pallas copy kernel, and
    restored to the original shape/dtype.
    """
    orig_shape = x.shape
    dtype = x.dtype
    n = x.size
    if n == 0:
        return x  # empty input: nothing to launch

    itemsize = jnp.dtype(dtype).itemsize
    align = _sublane_align(dtype)

    # --- 2-D slab view (contiguous reshape => no extra HBM traffic) ---
    cols = _pick_cols(n, orig_shape, x.ndim)
    rows = n // cols
    slab = x.reshape(rows, cols)

    # --- tile selection ---
    block_cols = _pick_block_cols(cols)
    n_col_blocks = pl.cdiv(cols, block_cols)          # always exact for cols
    block_rows = _pick_block_rows(rows, align, block_cols, itemsize,
                                  n_col_blocks)

    grid = (pl.cdiv(rows, block_rows), n_col_blocks)

    out = pl.pallas_call(
        _copy_kernel,
        out_shape=jax.ShapeDtypeStruct((rows, cols), dtype),
        grid=grid,
        in_specs=[pl.BlockSpec((block_rows, block_cols), lambda i, j: (i, j))],
        out_specs=pl.BlockSpec((block_rows, block_cols), lambda i, j: (i, j)),
        input_output_aliases={0: 0},
        cost_estimate=pl.CostEstimate(
            flops=0, transcendentals=0, bytes_accessed=2 * n * itemsize),
        compiler_params=pltpu.CompilerParams(
            dimension_semantics=("parallel", "parallel"),
            vmem_limit_bytes=_VMEM_LIMIT_BYTES,
        ),
    )(slab)

    return out.reshape(orig_shape)


if __name__ == "__main__":
    key = jax.random.PRNGKey(0)
    # Small NCHW-shaped example input consistent with a conv-style model.
    x = jax.random.normal(key, (2, 4, 16, 16), dtype=jnp.float32)

    fwd = jax.jit(base_forward)
    y = fwd(x)
    y = jax.block_until_ready(y)

    assert y.shape == x.shape and y.dtype == x.dtype
    assert bool(jnp.allclose(y, x)), "identity pass-through mismatch"
    print("KERNEL_OK")
</pallas_src>

<mosaic_0001>
module attributes {stable_mosaic.version = 11 : i64} {
  func.func @_copy_kernel(%arg0: i32, %arg1: i32, %arg2: memref<1x2048xf32, #tpu.memory_space<vmem>>, %arg3: memref<1x2048xf32, #tpu.memory_space<vmem>>) attributes {dimension_semantics = [#tpu.dimension_semantics<parallel>, #tpu.dimension_semantics<parallel>], iteration_bounds = array<i64: 1, 1>, scalar_prefetch = 0 : i64, scratch_operands = 0 : i64, tpu.core_type = #tpu.core_type<tc>, window_params = [{transform_indices = @transform_0, window_bounds = array<i64: 1, 2048>}, {transform_indices = @transform_1, window_bounds = array<i64: 1, 2048>}]} {
    %c0 = arith.constant 0 : index
    %c0_0 = arith.constant 0 : index
    %0 = vector.load %arg2[%c0, %c0_0] : memref<1x2048xf32, #tpu.memory_space<vmem>>, vector<1x2048xf32>
    %c0_1 = arith.constant 0 : index
    %c0_2 = arith.constant 0 : index
    %1 = vector.load %arg3[%c0_1, %c0_2] : memref<1x2048xf32, #tpu.memory_space<vmem>>, vector<1x2048xf32>
    tpu.vector_store %arg3[%c0_1, %c0_2], %0 {strides = array<i32>} : memref<1x2048xf32, #tpu.memory_space<vmem>>, vector<1x2048xf32>,
    return
  }
  func.func @transform_0(%arg0: i32, %arg1: i32) -> (i32, i32) {
    %c0_i32 = arith.constant 0 : i32
    return %arg0, %arg1 : i32, i32
  }
  func.func @transform_1(%arg0: i32, %arg1: i32) -> (i32, i32) {
    %c0_i32 = arith.constant 0 : i32
    return %arg0, %arg1 : i32, i32
  }
}

</mosaic_0001>

<bundles_post_ra>
// kernel: base_forward.1
= control target key start
LH: loop header
LB: loop body
LE: loop exit
PB: predicated region body
PF: predicated region fallthrough
CT: control target
= control target key end

     0   :  { %s38_s0 = inlined_call_operand.vmem [shape: f32[1,2048], index: 0, kind: input, shape index: {}, may-alias: {0,1}]   ;;  %s39_s1 = inlined_call_operand.vmem [shape: f32[1,2048], index: 1, kind: output, shape index: {}, may-alias: {0,1}]  }
   0x1   :  { %v8_v0 = vld [vmem:[%s38_s0] sm:$0xff]  ;;  %v9_v1 = vld [vmem:[%s38_s0 + $0x8] sm:$0xff] }
   0x2   :  { %10 = vst [vmem:[%s39_s1] sm:$0xff] %v8_v0 }
   0x3   :  { %11 = vst [vmem:[%s39_s1 + $0x8] sm:$0xff] %v9_v1 }

</bundles_post_ra>
